<compile_context>
chip_gen: v7x
topology: tpu7x:2x2x1
jax: 0.10.0
libtpu: 0.0.40
codegen_flags: <defaults>
</compile_context>

<pallas_src>
import jax
import jax.numpy as jnp
from jax import lax
from jax.experimental import pallas as pl
from jax.experimental.pallas import tpu as pltpu


# murmur3 fmix constants, pre-wrapped to signed int32 (only used by the non-TPU fallback).
_M1 = -2048144789     # 0x85EBCA6B
_M2 = -1028477387     # 0xC2B2AE35
_GOLD = -1640531535   # 0x9E3779B1


def _to_i32(v):
    """Wrap an arbitrary python int into signed-int32 range (host side)."""
    v &= 0xFFFFFFFF
    return v - (1 << 32) if v >= (1 << 31) else v


def _srl(x, k):
    """Logical right shift for int32 arrays (arith shift + mask)."""
    return (x >> k) & jnp.int32((1 << (32 - k)) - 1)


def _hash_bits24(shape, salt):
    """Fallback counter-based hash PRNG -> 24 uniform bits per element (int32-only vector
    ops; lowers in the interpreter / on non-TPU backends where pltpu.prng_* is absent)."""
    r = lax.broadcasted_iota(jnp.int32, shape, 0)
    c = lax.broadcasted_iota(jnp.int32, shape, 1)
    x = r * jnp.int32(shape[1]) + c + salt
    x = x ^ _srl(x, 16)
    x = x * jnp.int32(_M1)
    x = x ^ _srl(x, 13)
    x = x * jnp.int32(_M2)
    x = x ^ _srl(x, 16)
    return x & jnp.int32(0x00FFFFFF)


def _make_kernel(num_hidden, n_rows, out_channels, out_padded, dropout_p,
                 compute_dtype, eps, use_hw_rng):
    apply_dropout = 0.0 < dropout_p < 1.0
    drop_all = dropout_p >= 1.0
    inv_n = float(1.0 / n_rows)
    thresh = int(min(round(dropout_p * (1 << 24)), (1 << 24) - 1))

    def kernel(seed_ref, x_ref, *refs):
        out_ref = refs[-1]
        prm = refs[:-1]

        if apply_dropout:
            seed = seed_ref[0]
            if use_hw_rng:
                # Seed the hardware PRNG once; the state advances per prng_random_bits call
                # so every layer automatically draws a fresh mask.
                pltpu.prng_seed(seed)

        # Rows of ones for the MXU column sums (hoisted out of the layer loop; 8 sublanes
        # keep the matmul M-dim native, row 0 of the result is used).
        ones_rows = jnp.ones((8, n_rows), jnp.float32)

        h = x_ref[...].astype(compute_dtype)
        idx = 0
        for layer in range(num_hidden):
            w = prm[idx][...]            # (K, H)  compute_dtype
            gamma = prm[idx + 1][...]    # (1, H)  f32
            beta = prm[idx + 2][...]     # (1, H)  f32
            idx += 3

            # Linear on the MXU (f32 accumulation).  Hidden-layer bias omitted: it cancels
            # exactly under training-mode BatchNorm.
            h = jnp.dot(h, w, preferred_element_type=jnp.float32)

            # BatchNorm1d (training mode, biased batch stats).  Column sums ride the MXU
            # (idle unit at these contraction sizes) instead of cross-sublane reductions.
            s1 = jnp.dot(ones_rows, h, preferred_element_type=jnp.float32)[0:1, :]
            s2 = jnp.dot(ones_rows, h * h, preferred_element_type=jnp.float32)[0:1, :]
            mu = s1 * inv_n
            var = jnp.maximum(s2 * inv_n - mu * mu, 0.0)   # clamp f32 cancellation
            scale = gamma * lax.rsqrt(var + eps)
            shift = beta - mu * scale
            h = h * scale + shift

            # ReLU + dropout fused into a single select.  The 1/(1-p) keep-scale is folded
            # into the next layer's weights on the host, so only the mask is applied here.
            if apply_dropout:
                if use_hw_rng:
                    bits = pltpu.prng_random_bits(h.shape)
                    if bits.dtype != jnp.int32:
                        bits = pltpu.bitcast(bits, jnp.int32)
                    r24 = bits & jnp.int32(0x00FFFFFF)
                else:
                    salt = seed * jnp.int32(_M1) + jnp.int32(_to_i32((layer + 1) * _GOLD))
                    r24 = _hash_bits24(h.shape, salt)
                keep = r24 >= jnp.int32(thresh)          # keep with probability (1 - p)
                h = jnp.where(keep & (h > 0.0), h, 0.0)
            elif drop_all:
                h = jnp.zeros_like(h)                    # torch: F.dropout(p=1) zeroes all
            else:
                h = jnp.maximum(h, 0.0)

            h = h.astype(compute_dtype)

        # Final Linear + bias + log_softmax over the real (unpadded) classes.
        w = prm[idx][...]        # (H, out_padded)  compute_dtype, zero-padded lanes
        b = prm[idx + 1][...]    # (1, out_padded)  f32
        logits = jnp.dot(h, w, preferred_element_type=jnp.float32) + b
        if out_padded != out_channels:
            col = lax.broadcasted_iota(jnp.int32, logits.shape, 1)
            logits = jnp.where(col < out_channels, logits, jnp.float32(-1e30))
        m = jnp.max(logits, axis=-1, keepdims=True)
        shifted = logits - m
        lse = jnp.log(jnp.sum(jnp.exp(shifted), axis=-1, keepdims=True))
        out_ref[...] = shifted - lse   # lane-dense 128-wide store; sliced outside

    return kernel


def init_mlp_params(key, in_channels, hidden_channels, out_channels, num_layers):
    """Deterministic init mimicking torch defaults: U(-1/sqrt(fan_in), 1/sqrt(fan_in))."""
    dims = [in_channels] + [hidden_channels] * (num_layers - 1) + [out_channels]
    params = []
    for i in range(num_layers):
        fan_in, fan_out = dims[i], dims[i + 1]
        key, kw, kb = jax.random.split(key, 3)
        bound = 1.0 / (fan_in ** 0.5)
        W = jax.random.uniform(kw, (fan_out, fan_in), jnp.float32, -bound, bound)  # torch (out, in)
        b = jax.random.uniform(kb, (fan_out,), jnp.float32, -bound, bound)
        layer = {"W": W, "b": b}
        if i < num_layers - 1:  # hidden layers also carry a BatchNorm1d
            layer["gamma"] = jnp.ones((fan_out,), jnp.float32)
            layer["beta"] = jnp.zeros((fan_out,), jnp.float32)
        params.append(layer)
    return params


def mlp_forward(x, params, dropout_p, seed=0, compute_dtype=jnp.bfloat16, eps=1e-5,
                use_hw_rng=None):
    if not (0.0 <= float(dropout_p) <= 1.0):
        raise ValueError("dropout_p must be in [0, 1]")
    if use_hw_rng is None:
        # Hardware PRNG on real TPUs; int32 hash fallback elsewhere (interpret / CPU).
        use_hw_rng = jax.default_backend() == "tpu"

    n_rows, in_c = x.shape
    num_layers = len(params)
    num_hidden = num_layers - 1
    out_channels = params[-1]["W"].shape[0]
    out_padded = ((out_channels + 127) // 128) * 128  # lane-dense output slab

    fold_scale = 0.0 < dropout_p < 1.0
    keep_scale = 1.0 / (1.0 - dropout_p) if fold_scale else 1.0

    flat = []
    for i, layer in enumerate(params[:-1]):
        w_t = layer["W"].T                                    # (in, out): hot path is h @ W
        if i > 0 and fold_scale:
            w_t = w_t * keep_scale                            # fold dropout keep-scale
        flat += [w_t.astype(compute_dtype),
                 layer["gamma"].reshape(1, -1).astype(jnp.float32),
                 layer["beta"].reshape(1, -1).astype(jnp.float32)]

    w_last = params[-1]["W"].T                                # (hidden, out)
    b_last = params[-1]["b"].reshape(1, -1)
    if num_hidden > 0 and fold_scale:
        w_last = w_last * keep_scale                          # fold last dropout keep-scale
    pad = out_padded - out_channels
    if pad:
        w_last = jnp.pad(w_last, ((0, 0), (0, pad)))
        b_last = jnp.pad(b_last, ((0, 0), (0, pad)))
    flat += [w_last.astype(compute_dtype), b_last.astype(jnp.float32)]

    kernel = _make_kernel(num_hidden, n_rows, out_channels, out_padded,
                          float(dropout_p), compute_dtype, eps, use_hw_rng)

    # Advisory cost estimate for XLA's scheduler.
    dims = [in_c] + [params[i]["W"].shape[0] for i in range(num_layers)]
    flops = 0
    for i in range(num_layers):
        n_out = dims[i + 1] if i < num_layers - 1 else out_padded
        flops += 2 * n_rows * dims[i] * n_out
        if i < num_layers - 1:
            flops += 2 * (2 * 8 * n_rows * dims[i + 1])       # MXU column-sum matmuls
    bytes_accessed = 4 * (x.size + n_rows * out_padded) + sum(
        int(a.size) * a.dtype.itemsize for a in flat)
    transcendentals = n_rows * out_padded + num_hidden * max(dims)  # exp + rsqrt

    # Explicit VMEM budget: whole batch resident (h, h*h, select temps, bf16 copy) +
    # params + I/O, with 25% headroom; floored at the 32 MiB default, capped at 128 MiB.
    max_width = max(dims[1:] + [out_padded, in_c])
    act_bytes = n_rows * max_width * (4 * 4 + 2)
    io_bytes = 4 * (x.size + n_rows * out_padded)
    param_bytes = sum(int(a.size) * a.dtype.itemsize for a in flat)
    vmem_needed = int(1.25 * (act_bytes + io_bytes + param_bytes)) + (1 << 20)
    vmem_limit = max(32 * 1024 * 1024, min(vmem_needed, 128 * 1024 * 1024))
    # TODO(synk): v7x physical VMEM is 64 MiB; batches needing more require the row-tiled
    #             two-pass BN grid described in the header TODO.

    seed_arr = jnp.asarray([seed], dtype=jnp.int32)

    out = pl.pallas_call(
        kernel,
        out_shape=jax.ShapeDtypeStruct((n_rows, out_padded), jnp.float32),
        in_specs=[pl.BlockSpec(memory_space=pltpu.MemorySpace.SMEM)]       # seed scalar
                 + [pl.BlockSpec(memory_space=pltpu.MemorySpace.VMEM)] * (1 + len(flat)),
        out_specs=pl.BlockSpec(memory_space=pltpu.MemorySpace.VMEM),
        compiler_params=pltpu.CompilerParams(vmem_limit_bytes=int(vmem_limit)),
        cost_estimate=pl.CostEstimate(flops=int(flops),
                                      transcendentals=int(transcendentals),
                                      bytes_accessed=int(bytes_accessed)),
    )(seed_arr, x, *flat)
    return out[:, :out_channels]


def mlp_reference(x, params, compute_dtype=jnp.float32, eps=1e-5):
    """Pure-JAX reference (dropout disabled) matching torch training-mode forward."""
    h = x
    for layer in params[:-1]:
        h = jnp.dot(h.astype(compute_dtype), layer["W"].T.astype(compute_dtype),
                    preferred_element_type=jnp.float32) + layer["b"]
        mu = jnp.mean(h, axis=0, keepdims=True)
        var = jnp.mean((h - mu) ** 2, axis=0, keepdims=True)
        h = (h - mu) / jnp.sqrt(var + eps) * layer["gamma"] + layer["beta"]
        h = jnp.maximum(h, 0.0)
    logits = jnp.dot(h.astype(compute_dtype), params[-1]["W"].T.astype(compute_dtype),
                     preferred_element_type=jnp.float32) + params[-1]["b"]
    return jax.nn.log_softmax(logits, axis=-1)


if __name__ == "__main__":
    N, in_c, hid_c, out_c, num_layers, dropout = 128, 32, 128, 16, 3, 0.5

    key = jax.random.PRNGKey(0)
    kx, kp = jax.random.split(key)
    x = jax.random.normal(kx, (N, in_c), jnp.float32)
    params = init_mlp_params(kp, in_c, hid_c, out_c, num_layers)

    # 1) f32 compute path, dropout off: check against pure-JAX reference.  (BN column sums
    #    ride the MXU at default matmul precision, hence the slightly relaxed tolerance.)
    out_f32 = jax.block_until_ready(mlp_forward(x, params, 0.0, compute_dtype=jnp.float32))
    ref_f32 = mlp_reference(x, params, jnp.float32)
    assert out_f32.shape == (N, out_c)
    assert jnp.allclose(out_f32, ref_f32, atol=2e-3, rtol=2e-3), "f32 mismatch vs reference"

    # 2) bf16 MXU path, dropout off: check against bf16-cast reference.
    out_bf16 = jax.block_until_ready(mlp_forward(x, params, 0.0, compute_dtype=jnp.bfloat16))
    ref_bf16 = mlp_reference(x, params, jnp.bfloat16)
    assert jnp.allclose(out_bf16, ref_bf16, atol=2e-2, rtol=2e-2), "bf16 mismatch vs reference"

    # 3) Full training-mode forward with dropout (HW PRNG on TPU, runtime seed).
    out = jax.block_until_ready(mlp_forward(x, params, dropout, seed=1234))
    assert out.shape == (N, out_c)
    assert bool(jnp.all(jnp.isfinite(out)))
    assert jnp.allclose(jnp.exp(out).sum(-1), 1.0, atol=1e-3)   # valid log_softmax rows
    out2 = jax.block_until_ready(mlp_forward(x, params, dropout, seed=4321))
    assert not bool(jnp.allclose(out, out2)), "dropout mask did not depend on seed"

    print("KERNEL_OK")
</pallas_src>

<mosaic_0001>
module attributes {stable_mosaic.version = 11 : i64} {
  func.func @kernel(%arg0: memref<1xi32, #tpu.memory_space<smem>>, %arg1: memref<128x32xf32, #tpu.memory_space<vmem>>, %arg2: memref<32x128xf32, #tpu.memory_space<vmem>>, %arg3: memref<1x128xf32, #tpu.memory_space<vmem>>, %arg4: memref<1x128xf32, #tpu.memory_space<vmem>>, %arg5: memref<128x128xf32, #tpu.memory_space<vmem>>, %arg6: memref<1x128xf32, #tpu.memory_space<vmem>>, %arg7: memref<1x128xf32, #tpu.memory_space<vmem>>, %arg8: memref<128x128xf32, #tpu.memory_space<vmem>>, %arg9: memref<1x128xf32, #tpu.memory_space<vmem>>, %arg10: memref<128x128xf32, #tpu.memory_space<vmem>>) attributes {dimension_semantics = [], scalar_prefetch = 0 : i64, scratch_operands = 0 : i64, tpu.core_type = #tpu.core_type<tc>} {
    %cst = arith.constant 1.000000e+00 : f32
    %0 = vector.broadcast %cst : f32 to vector<8x128xf32>
    %c0 = arith.constant 0 : index
    %c0_0 = arith.constant 0 : index
    %1 = vector.load %arg1[%c0, %c0_0] : memref<128x32xf32, #tpu.memory_space<vmem>>, vector<128x32xf32>
    %c0_1 = arith.constant 0 : index
    %c0_2 = arith.constant 0 : index
    %2 = vector.load %arg2[%c0_1, %c0_2] : memref<32x128xf32, #tpu.memory_space<vmem>>, vector<32x128xf32>
    %c0_3 = arith.constant 0 : index
    %c0_4 = arith.constant 0 : index
    %3 = vector.load %arg3[%c0_3, %c0_4] : memref<1x128xf32, #tpu.memory_space<vmem>>, vector<1x128xf32>
    %c0_5 = arith.constant 0 : index
    %c0_6 = arith.constant 0 : index
    %4 = vector.load %arg4[%c0_5, %c0_6] : memref<1x128xf32, #tpu.memory_space<vmem>>, vector<1x128xf32>
    %cst_7 = arith.constant dense<0.000000e+00> : vector<128x128xf32>
    %5 = tpu.matmul %1, %2, %cst_7 {dimension_numbers = #tpu.dot_dimension_numbers<[1], [0], [0], [1], [0, 0, 1, 1], [], []>} : vector<128x32xf32>, vector<32x128xf32>, vector<128x128xf32> -> vector<128x128xf32>
    %cst_8 = arith.constant dense<0.000000e+00> : vector<8x128xf32>
    %6 = tpu.matmul %0, %5, %cst_8 {dimension_numbers = #tpu.dot_dimension_numbers<[1], [0], [0], [1], [0, 0, 1, 1], [], []>} : vector<8x128xf32>, vector<128x128xf32>, vector<8x128xf32> -> vector<8x128xf32>
    %7 = vector.extract_strided_slice %6 {offsets = [0, 0], sizes = [1, 128], strides = [1, 1]} : vector<8x128xf32> to vector<1x128xf32>
    %8 = arith.mulf %5, %5 : vector<128x128xf32>
    %cst_9 = arith.constant dense<0.000000e+00> : vector<8x128xf32>
    %9 = tpu.matmul %0, %8, %cst_9 {dimension_numbers = #tpu.dot_dimension_numbers<[1], [0], [0], [1], [0, 0, 1, 1], [], []>} : vector<8x128xf32>, vector<128x128xf32>, vector<8x128xf32> -> vector<8x128xf32>
    %10 = vector.extract_strided_slice %9 {offsets = [0, 0], sizes = [1, 128], strides = [1, 1]} : vector<8x128xf32> to vector<1x128xf32>
    %cst_10 = arith.constant 7.812500e-03 : f32
    %11 = vector.broadcast %cst_10 : f32 to vector<1x128xf32>
    %12 = arith.mulf %7, %11 : vector<1x128xf32>
    %cst_11 = arith.constant 7.812500e-03 : f32
    %13 = vector.broadcast %cst_11 : f32 to vector<1x128xf32>
    %14 = arith.mulf %10, %13 : vector<1x128xf32>
    %15 = arith.mulf %12, %12 : vector<1x128xf32>
    %16 = arith.subf %14, %15 : vector<1x128xf32>
    %cst_12 = arith.constant 0.000000e+00 : f32
    %17 = vector.broadcast %cst_12 : f32 to vector<1x128xf32>
    %18 = arith.maximumf %16, %17 : vector<1x128xf32>
    %cst_13 = arith.constant 9.99999974E-6 : f32
    %19 = vector.broadcast %cst_13 : f32 to vector<1x128xf32>
    %20 = arith.addf %18, %19 : vector<1x128xf32>
    %21 = math.rsqrt %20 : vector<1x128xf32>
    %22 = arith.mulf %3, %21 : vector<1x128xf32>
    %23 = arith.mulf %12, %22 : vector<1x128xf32>
    %24 = arith.subf %4, %23 : vector<1x128xf32>
    %25 = vector.broadcast %22 : vector<1x128xf32> to vector<128x128xf32>
    %26 = arith.mulf %5, %25 : vector<128x128xf32>
    %27 = vector.broadcast %24 : vector<1x128xf32> to vector<128x128xf32>
    %28 = arith.addf %26, %27 : vector<128x128xf32>
    %cst_14 = arith.constant 0.000000e+00 : f32
    %29 = vector.broadcast %cst_14 : f32 to vector<128x128xf32>
    %30 = arith.maximumf %28, %29 : vector<128x128xf32>
    %c0_15 = arith.constant 0 : index
    %c0_16 = arith.constant 0 : index
    %31 = vector.load %arg5[%c0_15, %c0_16] : memref<128x128xf32, #tpu.memory_space<vmem>>, vector<128x128xf32>
    %c0_17 = arith.constant 0 : index
    %c0_18 = arith.constant 0 : index
    %32 = vector.load %arg6[%c0_17, %c0_18] : memref<1x128xf32, #tpu.memory_space<vmem>>, vector<1x128xf32>
    %c0_19 = arith.constant 0 : index
    %c0_20 = arith.constant 0 : index
    %33 = vector.load %arg7[%c0_19, %c0_20] : memref<1x128xf32, #tpu.memory_space<vmem>>, vector<1x128xf32>
    %cst_21 = arith.constant dense<0.000000e+00> : vector<128x128xf32>
    %34 = tpu.matmul %30, %31, %cst_21 {dimension_numbers = #tpu.dot_dimension_numbers<[1], [0], [0], [1], [0, 0, 1, 1], [], []>} : vector<128x128xf32>, vector<128x128xf32>, vector<128x128xf32> -> vector<128x128xf32>
    %cst_22 = arith.constant dense<0.000000e+00> : vector<8x128xf32>
    %35 = tpu.matmul %0, %34, %cst_22 {dimension_numbers = #tpu.dot_dimension_numbers<[1], [0], [0], [1], [0, 0, 1, 1], [], []>} : vector<8x128xf32>, vector<128x128xf32>, vector<8x128xf32> -> vector<8x128xf32>
    %36 = vector.extract_strided_slice %35 {offsets = [0, 0], sizes = [1, 128], strides = [1, 1]} : vector<8x128xf32> to vector<1x128xf32>
    %37 = arith.mulf %34, %34 : vector<128x128xf32>
    %cst_23 = arith.constant dense<0.000000e+00> : vector<8x128xf32>
    %38 = tpu.matmul %0, %37, %cst_23 {dimension_numbers = #tpu.dot_dimension_numbers<[1], [0], [0], [1], [0, 0, 1, 1], [], []>} : vector<8x128xf32>, vector<128x128xf32>, vector<8x128xf32> -> vector<8x128xf32>
    %39 = vector.extract_strided_slice %38 {offsets = [0, 0], sizes = [1, 128], strides = [1, 1]} : vector<8x128xf32> to vector<1x128xf32>
    %cst_24 = arith.constant 7.812500e-03 : f32
    %40 = vector.broadcast %cst_24 : f32 to vector<1x128xf32>
    %41 = arith.mulf %36, %40 : vector<1x128xf32>
    %cst_25 = arith.constant 7.812500e-03 : f32
    %42 = vector.broadcast %cst_25 : f32 to vector<1x128xf32>
    %43 = arith.mulf %39, %42 : vector<1x128xf32>
    %44 = arith.mulf %41, %41 : vector<1x128xf32>
    %45 = arith.subf %43, %44 : vector<1x128xf32>
    %cst_26 = arith.constant 0.000000e+00 : f32
    %46 = vector.broadcast %cst_26 : f32 to vector<1x128xf32>
    %47 = arith.maximumf %45, %46 : vector<1x128xf32>
    %cst_27 = arith.constant 9.99999974E-6 : f32
    %48 = vector.broadcast %cst_27 : f32 to vector<1x128xf32>
    %49 = arith.addf %47, %48 : vector<1x128xf32>
    %50 = math.rsqrt %49 : vector<1x128xf32>
    %51 = arith.mulf %32, %50 : vector<1x128xf32>
    %52 = arith.mulf %41, %51 : vector<1x128xf32>
    %53 = arith.subf %33, %52 : vector<1x128xf32>
    %54 = vector.broadcast %51 : vector<1x128xf32> to vector<128x128xf32>
    %55 = arith.mulf %34, %54 : vector<128x128xf32>
    %56 = vector.broadcast %53 : vector<1x128xf32> to vector<128x128xf32>
    %57 = arith.addf %55, %56 : vector<128x128xf32>
    %cst_28 = arith.constant 0.000000e+00 : f32
    %58 = vector.broadcast %cst_28 : f32 to vector<128x128xf32>
    %59 = arith.maximumf %57, %58 : vector<128x128xf32>
    %c0_29 = arith.constant 0 : index
    %c0_30 = arith.constant 0 : index
    %60 = vector.load %arg8[%c0_29, %c0_30] : memref<128x128xf32, #tpu.memory_space<vmem>>, vector<128x128xf32>
    %c0_31 = arith.constant 0 : index
    %c0_32 = arith.constant 0 : index
    %61 = vector.load %arg9[%c0_31, %c0_32] : memref<1x128xf32, #tpu.memory_space<vmem>>, vector<1x128xf32>
    %cst_33 = arith.constant dense<0.000000e+00> : vector<128x128xf32>
    %62 = tpu.matmul %59, %60, %cst_33 {dimension_numbers = #tpu.dot_dimension_numbers<[1], [0], [0], [1], [0, 0, 1, 1], [], []>} : vector<128x128xf32>, vector<128x128xf32>, vector<128x128xf32> -> vector<128x128xf32>
    %63 = vector.broadcast %61 : vector<1x128xf32> to vector<128x128xf32>
    %64 = arith.addf %62, %63 : vector<128x128xf32>
    %65 = tpu.iota {dimensions = array<i32: 1>} : vector<128x128xi32>
    %c16_i32 = arith.constant 16 : i32
    %66 = vector.broadcast %c16_i32 : i32 to vector<128x128xi32>
    %67 = arith.cmpi slt, %65, %66 : vector<128x128xi32>
    %cst_34 = arith.constant -1.000000e+30 : f32
    %68 = vector.broadcast %cst_34 : f32 to vector<128x128xf32>
    %69 = arith.select %67, %64, %68 : vector<128x128xi1>, vector<128x128xf32>
    %cst_35 = arith.constant dense<0xFF800000> : vector<128xf32>
    %70 = vector.multi_reduction <maximumf>, %69, %cst_35 [1] : vector<128x128xf32> to vector<128xf32>
    %71 = vector.shape_cast %70 : vector<128xf32> to vector<128x1xf32>
    %72 = vector.broadcast %71 : vector<128x1xf32> to vector<128x128xf32>
    %73 = arith.subf %69, %72 : vector<128x128xf32>
    %74 = math.exp %73 : vector<128x128xf32>
    %cst_36 = arith.constant dense<0.000000e+00> : vector<128xf32>
    %75 = vector.multi_reduction <add>, %74, %cst_36 [1] : vector<128x128xf32> to vector<128xf32>
    %76 = vector.shape_cast %75 : vector<128xf32> to vector<128x1xf32>
    %77 = math.log %76 : vector<128x1xf32>
    %78 = vector.broadcast %77 : vector<128x1xf32> to vector<128x128xf32>
    %79 = arith.subf %73, %78 : vector<128x128xf32>
    %c0_37 = arith.constant 0 : index
    %c0_38 = arith.constant 0 : index
    %80 = vector.load %arg10[%c0_37, %c0_38] : memref<128x128xf32, #tpu.memory_space<vmem>>, vector<128x128xf32>
    tpu.vector_store %arg10[%c0_37, %c0_38], %79 {strides = array<i32>} : memref<128x128xf32, #tpu.memory_space<vmem>>, vector<128x128xf32>,
    return
  }
}

</mosaic_0001>

<bundles_post_ra>
// kernel: tpu_custom_call.1
= control target key start
LH: loop header
LB: loop body
LE: loop exit
PB: predicated region body
PF: predicated region fallthrough
CT: control target
= control target key end

     0   :  { %16 = vsyncpa [#allocation4], 0  ;;  %s2618_s0 = inlined_call_operand.<no memory space> [shape: s32[1], index: 0, kind: input, shape index: {}]   ;;  %s2619_s1 = inlined_call_operand.vmem [shape: f32[128,32], index: 1, kind: input, shape index: {}]   ;;  %s2620_s2 = inlined_call_operand.vmem [shape: f32[32,128], index: 2, kind: input, shape index: {}]   ;;  %s2621_s3 = inlined_call_operand.vmem [shape: f32[1,128], index: 3, kind: input, shape index: {}]   ;;  %s2622_s4 = inlined_call_operand.vmem [shape: f32[1,128], index: 4, kind: input, shape index: {}]   ;;  %s2623_s5 = inlined_call_operand.vmem [shape: f32[128,128], index: 5, kind: input, shape index: {}]   ;;  %s2624_s6 = inlined_call_operand.vmem [shape: f32[1,128], index: 6, kind: input, shape index: {}]   ;;  %s2625_s7 = inlined_call_operand.vmem [shape: f32[1,128], index: 7, kind: input, shape index: {}]   ;;  %s2626_s8 = inlined_call_operand.hbm [shape: f32[128,128], index: 8, kind: input, shape index: {}]   ;;  %s2627_s9 = inlined_call_operand.vmem [shape: f32[1,128], index: 9, kind: input, shape index: {}]   ;;  %s2628_s10 = inlined_call_operand.hbm [shape: f32[128,128], index: 10, kind: output, shape index: {}]  }
   0x1   :  { %17 = vsyncpa [#allocation5], 0  ;;  %s2007_s12 = smov [#allocation3]   ;;  %s1959_s16 = scalar_lea.hbm %s2626_s8, 2048 }
   0x2   :  { %s39_s13 = sshll.u32 %s2007_s12, 4  ;;  %p1960_p0 = scmp.ne.s32.totalorder %s2626_s8, %s1959_s16  ;;  %s40_s13 = int_to_ptr.vmem [resolvable:$true] %s39_s13 }
   0x3   :  { %p1963_p1 = scmp.lt.u32.totalorder %s1959_s16, %s2626_s8 }
   0x5   :  { %p1965_p2 = pnand %p1963_p1, %p1960_p0 }
   0x7   :  { %1968 = shalt.err (!%p1965_p2)
}
   0x8   :  { %s1969_s21 = scalar_lea.vmem %s40_s13, 2048  ;;  %p1974_p4 = scmp.lt.s32.totalorder %s40_s13, %s40_s13 }
   0x9   :  { %p1970_p3 = scmp.ne.s32.totalorder %s40_s13, %s1969_s21  ;;  %p1975_p5 = scmp.lt.s32.totalorder %s1969_s21, %s1969_s21 }
   0xb   :  { %p1976_p6 = por %p1975_p5, %p1974_p4 }
   0xd   :  { %p1977_p7 = pnand %p1976_p6, %p1970_p3 }
   0xf   :  { %1980 = shalt.err (!%p1977_p7)
}
  0x10   :  { %s2008_s22 = smov 128   ;;  %s2009_s23 = smov 8  }
  0x11   :  { %45 = dma.hbm_to_vmem [thread:$0]  %s2626_s8, 2048, %s40_s13, [#allocation4], %s2008_s22, %s2008_s22, %s2009_s23  }
  0x12   :  { %2003 = dma.done.wait [#allocation4], 2048  }
  0x13   :  { %2004 = vsyncadd [#allocation4], 4294965248  ;;  %vm73_vm0 = vcmask 261120   ;;  %v67_v0 = vld [vmem:[%s2620_s2] sm:$0xff]  ;;  %v68_v1 = vld [vmem:[%s2620_s2 + $0x8] sm:$0xff]  ;;  %v2010_v22 = vmov 0.0|0.0  }
  0x14   :  { %v69_v2 = vld [vmem:[%s2620_s2 + $0x10] sm:$0xff]  ;;  %v1715_v3 = vpack.c.bf16 %v68_v1, %v67_v0  ;;  %v70_v4 = vld [vmem:[%s2620_s2 + $0x18] sm:$0xff]  ;;  %v51_v5 = vld [vmem:[%s2619_s1] sm:$0xff]  ;;  %1747 = vmatprep.subr.bf16.mxu0 %v2010_v22  ;;  %vm2011_vm1 = vmmov 0   ;;  %v2012_v23 = vmov 0.0  }
  0x15   :  { %v1719_v6 = vpack.c.bf16 %v70_v4, %v69_v2  ;;  %1439 = vmatprep.mubr.msk.f32.mxu1 %vm73_vm0, %v51_v5  ;;  %v52_v7 = vld [vmem:[%s2619_s1 + $0x8] sm:$0xff]  ;;  %v53_v8 = vld [vmem:[%s2619_s1 + $0x10] sm:$0xff]  ;;  %v54_v9 = vld [vmem:[%s2619_s1 + $0x18] sm:$0xff]  ;;  %1530 = vmatprep.mubr.msk.f32.mxu0 %vm2011_vm1, %v2012_v23 }
  0x16   :  { %1716 = vmatprep.subr.bf16.mxu1 %v1715_v3  ;;  %v55_v10 = vld [vmem:[%s2619_s1 + $0x20] sm:$0xff]  ;;  %v56_v11 = vld [vmem:[%s2619_s1 + $0x28] sm:$0xff]  ;;  %v57_v12 = vld [vmem:[%s2619_s1 + $0x30] sm:$0xff] }
  0x17   :  { %1718 = vmatpush3.bf16.msra.mxu1 %v1715_v3  ;;  %v58_v13 = vld [vmem:[%s2619_s1 + $0x38] sm:$0xff]  ;;  %v59_v14 = vld [vmem:[%s2619_s1 + $0x40] sm:$0xff]  ;;  %v60_v15 = vld [vmem:[%s2619_s1 + $0x48] sm:$0xff] }
  0x18   :  { %1720 = vmatprep.subr.bf16.mxu1 %v1719_v6  ;;  %v61_v16 = vld [vmem:[%s2619_s1 + $0x50] sm:$0xff]  ;;  %v62_v17 = vld [vmem:[%s2619_s1 + $0x58] sm:$0xff]  ;;  %v63_v18 = vld [vmem:[%s2619_s1 + $0x60] sm:$0xff] }
  0x19   :  { %v64_v19 = vld [vmem:[%s2619_s1 + $0x68] sm:$0xff]  ;;  %v65_v20 = vld [vmem:[%s2619_s1 + $0x70] sm:$0xff]  ;;  %v66_v21 = vld [vmem:[%s2619_s1 + $0x78] sm:$0xff] }
  0x1b   :  { %1722 = vmatpush3.bf16.msra.mxu1 %v1719_v6 }
  0x1c   :  { %1723 = vmatprep.subr.bf16.mxu1 %v2010_v22 }
  0x1e   :  { %1440 = vmatmul.mubr.msk.f32.vlgmr.msra.gmra.mrb[0].mxu1 %vm73_vm0, %v52_v7 }
  0x1f   :  { %1442 = vmatprep.mubr.msk.f32.mxu1 %vm73_vm0, %v53_v8  ;;  %v2013_v8 = vmov 1.0  }
  0x22   :  { %1443 = vmatmul.mubr.msk.f32.gmra.mrb[2].mxu1 %vm73_vm0, %v54_v9  ;;  %v493_v9 = vld [vmem:[%s2623_s5] sm:$0xff] }
  0x23   :  { %1445 = vmatprep.mubr.msk.f32.mxu1 %vm73_vm0, %v55_v10  ;;  %v494_v10 = vld [vmem:[%s2623_s5 + $0x8] sm:$0xff] }
  0x26   :  { %1446 = vmatmul.mubr.msk.f32.gmra.mrb[4].mxu1 %vm73_vm0, %v56_v11  ;;  %v1771_v11 = vpack.c.bf16 %v494_v10, %v493_v9 }
  0x27   :  { %1448 = vmatprep.mubr.msk.f32.mxu1 %vm73_vm0, %v57_v12  ;;  %v495_v12 = vld [vmem:[%s2623_s5 + $0x10] sm:$0xff] }
  0x2a   :  { %1449 = vmatmul.mubr.msk.f32.gmra.mrb[6].mxu1 %vm73_vm0, %v58_v13  ;;  %v496_v13 = vld [vmem:[%s2623_s5 + $0x18] sm:$0xff] }
  0x2b   :  { %1451 = vmatprep.mubr.msk.f32.mxu1 %vm73_vm0, %v59_v14  ;;  %v1775_v14 = vpack.c.bf16 %v496_v13, %v495_v12 }
  0x2e   :  { %1452 = vmatmul.mubr.msk.f32.gmra.mrb[8].mxu1 %vm73_vm0, %v60_v15  ;;  %v497_v15 = vld [vmem:[%s2623_s5 + $0x20] sm:$0xff] }
  0x2f   :  { %1454 = vmatprep.mubr.msk.f32.mxu1 %vm73_vm0, %v61_v16  ;;  %v498_v16 = vld [vmem:[%s2623_s5 + $0x28] sm:$0xff] }
  0x32   :  { %1455 = vmatmul.mubr.msk.f32.gmra.mrb[10].mxu1 %vm73_vm0, %v62_v17  ;;  %v1779_v17 = vpack.c.bf16 %v498_v16, %v497_v15 }
  0x33   :  { %1457 = vmatprep.mubr.msk.f32.mxu1 %vm73_vm0, %v63_v18  ;;  %v499_v18 = vld [vmem:[%s2623_s5 + $0x30] sm:$0xff] }
  0x36   :  { %1458 = vmatmul.mubr.msk.f32.gmra.mrb[12].mxu1 %vm73_vm0, %v64_v19  ;;  %v500_v19 = vld [vmem:[%s2623_s5 + $0x38] sm:$0xff] }
  0x37   :  { %1460 = vmatprep.mubr.msk.f32.mxu1 %vm73_vm0, %v65_v20  ;;  %v1783_v20 = vpack.c.bf16 %v500_v19, %v499_v18 }
  0x3a   :  { %1461 = vmatmul.mubr.msk.f32.gmra.mrb[14].mxu1 %vm73_vm0, %v66_v21  ;;  %v501_v21 = vld [vmem:[%s2623_s5 + $0x40] sm:$0xff] }
  0x3b   :  { %1495 = vmatprep.mubr.msk.f32.mxu1 %vm2011_vm1, %v2012_v23 }
  0xf1   :  { %v2167_v24 = vpop.f32.mrb[0].mxu1 }
  0xf2   :  { %v2169_v25 = vpop.f32.mrb[1].mxu1  ;;  %v338_v26 = vmul.f32 %v2167_v24, %v2167_v24 }
  0xf3   :  { %v1724_v27 = vpack.c.bf16 %v2167_v24, %v2169_v25  ;;  %v337_v28 = vmul.f32 %v2169_v25, %v2169_v25 }
  0xf5   :  { %v2177_v29 = vpop.f32.mrb[2].mxu1  ;;  %1725 = vmatpush3.bf16.msra.mxu1 %v1724_v27  ;;  %v1748_v30 = vpack.c.bf16 %v338_v26, %v337_v28  ;;  %v502_v26 = vld [vmem:[%s2623_s5 + $0x48] sm:$0xff]  ;;  %v503_v28 = vld [vmem:[%s2623_s5 + $0x50] sm:$0xff] }
  0xf6   :  { %v340_v31 = vmul.f32 %v2177_v29, %v2177_v29  ;;  %v2181_v32 = vpop.f32.mrb[3].mxu1  ;;  %1726 = vmatprep.subr.bf16.mxu1 %v2010_v22  ;;  %v1787_v27 = vpack.c.bf16 %v502_v26, %v501_v21 }
  0xf7   :  { %v1727_v33 = vpack.c.bf16 %v2177_v29, %v2181_v32  ;;  %v339_v34 = vmul.f32 %v2181_v32, %v2181_v32  ;;  %1749 = vmatpush3.bf16.msra.mxu0 %v1748_v30  ;;  %v504_v30 = vld [vmem:[%s2623_s5 + $0x58] sm:$0xff] }
  0xf8   :  { %1750 = vmatprep.subr.bf16.mxu0 %v2010_v22 }
  0xf9   :  { %v2189_v35 = vpop.f32.mrb[4].mxu1  ;;  %1728 = vmatpush3.bf16.msra.mxu1 %v1727_v33  ;;  %v1751_v36 = vpack.c.bf16 %v340_v31, %v339_v34  ;;  %v1791_v31 = vpack.c.bf16 %v504_v30, %v503_v28  ;;  %v505_v33 = vld [vmem:[%s2623_s5 + $0x60] sm:$0xff]  ;;  %v506_v34 = vld [vmem:[%s2623_s5 + $0x68] sm:$0xff] }
  0xfa   :  { %v342_v37 = vmul.f32 %v2189_v35, %v2189_v35  ;;  %v2193_v38 = vpop.f32.mrb[5].mxu1  ;;  %1729 = vmatprep.subr.bf16.mxu1 %v2010_v22 }
  0xfb   :  { %v1730_v39 = vpack.c.bf16 %v2189_v35, %v2193_v38  ;;  %v341_v40 = vmul.f32 %v2193_v38, %v2193_v38  ;;  %1752 = vmatpush3.bf16.msra.mxu0 %v1751_v36  ;;  %v1795_v36 = vpack.c.bf16 %v506_v34, %v505_v33 }
  0xfc   :  { %1753 = vmatprep.subr.bf16.mxu0 %v2010_v22 }
  0xfd   :  { %v2201_v41 = vpop.f32.mrb[6].mxu1  ;;  %1731 = vmatpush3.bf16.msra.mxu1 %v1730_v39  ;;  %v1754_v42 = vpack.c.bf16 %v342_v37, %v341_v40  ;;  %v507_v37 = vld [vmem:[%s2623_s5 + $0x70] sm:$0xff]  ;;  %v508_v39 = vld [vmem:[%s2623_s5 + $0x78] sm:$0xff] }
  0xfe   :  { %v344_v43 = vmul.f32 %v2201_v41, %v2201_v41  ;;  %v2205_v44 = vpop.f32.mrb[7].mxu1  ;;  %1732 = vmatprep.subr.bf16.mxu1 %v2010_v22  ;;  %v1799_v40 = vpack.c.bf16 %v508_v39, %v507_v37 }
  0xff   :  { %v1733_v45 = vpack.c.bf16 %v2201_v41, %v2205_v44  ;;  %v343_v46 = vmul.f32 %v2205_v44, %v2205_v44  ;;  %1755 = vmatpush3.bf16.msra.mxu0 %v1754_v42 }
 0x100   :  { %1756 = vmatprep.subr.bf16.mxu0 %v2010_v22 }
 0x101   :  { %v2213_v47 = vpop.f32.mrb[8].mxu1  ;;  %1734 = vmatpush3.bf16.msra.mxu1 %v1733_v45  ;;  %v1757_v48 = vpack.c.bf16 %v344_v43, %v343_v46 }
 0x102   :  { %v346_v49 = vmul.f32 %v2213_v47, %v2213_v47  ;;  %v2217_v50 = vpop.f32.mrb[9].mxu1  ;;  %1735 = vmatprep.subr.bf16.mxu1 %v2010_v22 }
 0x103   :  { %v1736_v51 = vpack.c.bf16 %v2213_v47, %v2217_v50  ;;  %v345_v52 = vmul.f32 %v2217_v50, %v2217_v50  ;;  %1758 = vmatpush3.bf16.msra.mxu0 %v1757_v48 }
 0x104   :  { %1759 = vmatprep.subr.bf16.mxu0 %v2010_v22 }
 0x105   :  { %v2225_v53 = vpop.f32.mrb[10].mxu1  ;;  %1737 = vmatpush3.bf16.msra.mxu1 %v1736_v51  ;;  %v1760_v54 = vpack.c.bf16 %v346_v49, %v345_v52 }
 0x106   :  { %v348_v55 = vmul.f32 %v2225_v53, %v2225_v53  ;;  %v2229_v56 = vpop.f32.mrb[11].mxu1  ;;  %1738 = vmatprep.subr.bf16.mxu1 %v2010_v22 }
 0x107   :  { %v1739_v57 = vpack.c.bf16 %v2225_v53, %v2229_v56  ;;  %v347_v58 = vmul.f32 %v2229_v56, %v2229_v56  ;;  %1761 = vmatpush3.bf16.msra.mxu0 %v1760_v54 }
 0x108   :  { %1762 = vmatprep.subr.bf16.mxu0 %v2010_v22 }
 0x109   :  { %v2237_v59 = vpop.f32.mrb[12].mxu1  ;;  %1740 = vmatpush3.bf16.msra.mxu1 %v1739_v57  ;;  %v1763_v60 = vpack.c.bf16 %v348_v55, %v347_v58  ;;  %v434_v57 = vlaneseq }
 0x10a   :  { %v350_v61 = vmul.f32 %v2237_v59, %v2237_v59  ;;  %v2241_v62 = vpop.f32.mrb[13].mxu1  ;;  %1741 = vmatprep.subr.bf16.mxu1 %v2010_v22 }
 0x10b   :  { %v1742_v63 = vpack.c.bf16 %v2237_v59, %v2241_v62  ;;  %v349_v0 = vmul.f32 %v2241_v62, %v2241_v62  ;;  %1764 = vmatpush3.bf16.msra.mxu0 %v1763_v60  ;;  %v435_v58 = vshrl.u32 %v434_v57, 7  ;;  %v71_v60 = vld [vmem:[%s2621_s3] sm:$0x1] }
 0x10c   :  { %1765 = vmatprep.subr.bf16.mxu0 %v2010_v22 }
 0x10d   :  { %v2249_v1 = vpop.f32.mrb[14].mxu1  ;;  %1743 = vmatpush3.bf16.msra.mxu1 %v1742_v63  ;;  %v1766_v2 = vpack.c.bf16 %v350_v61, %v349_v0  ;;  %v2319_v61 = vsub.s32 0, %v435_v58 }
 0x10e   :  { %v352_v3 = vmul.f32 %v2249_v1, %v2249_v1  ;;  %v2253_v4 = vpop.f32.mrb[15].mxu1  ;;  %1744 = vmatprep.subr.bf16.mxu1 %v2010_v22 }
 0x10f   :  { %v1745_v5 = vpack.c.bf16 %v2249_v1, %v2253_v4  ;;  %v351_v6 = vmul.f32 %v2253_v4, %v2253_v4  ;;  %1767 = vmatpush3.bf16.msra.mxu0 %v1766_v2  ;;  %v72_v2 = vld [vmem:[%s2622_s4] sm:$0x1] }
 0x110   :  { %1768 = vmatprep.subr.bf16.mxu0 %v2010_v22 }
 0x111   :  { %1746 = vmatpush3.bf16.msra.mxu1 %v1745_v5  ;;  %v1769_v7 = vpack.c.bf16 %v352_v3, %v351_v6 }
 0x112   :  { %1772 = vmatprep.subr.bf16.mxu1 %v1771_v11 }
 0x113   :  { %1770 = vmatpush3.bf16.msra.mxu0 %v1769_v7 }
 0x114   :  { %1496 = vmatmul.mubr.f32.vlgmr.msra.gmra.mrb[16].mxu1 %v2013_v8  ;;  %1803 = vmatprep.subr.bf16.mxu0 %v2010_v22 }
 0x115   :  { %1774 = vmatpush3.bf16.msra.mxu1 %v1771_v11 }
 0x116   :  { %1531 = vmatmul.mubr.f32.vlgmr.msra.gmra.mrb[0].mxu0 %v2013_v8  ;;  %1776 = vmatprep.subr.bf16.mxu1 %v1775_v14 }
 0x117   :  { %1621 = vmatprep.mubr.msk.f32.mxu0 %vm2011_vm1, %v2012_v23 }
 0x119   :  { %1778 = vmatpush3.bf16.msra.mxu1 %v1775_v14 }
 0x11a   :  { %1780 = vmatprep.subr.bf16.mxu1 %v1779_v17 }
 0x11d   :  { %1782 = vmatpush3.bf16.msra.mxu1 %v1779_v17 }
 0x11e   :  { %1784 = vmatprep.subr.bf16.mxu1 %v1783_v20 }
 0x121   :  { %1786 = vmatpush3.bf16.msra.mxu1 %v1783_v20 }
 0x122   :  { %1788 = vmatprep.subr.bf16.mxu1 %v1787_v27 }
 0x125   :  { %1790 = vmatpush3.bf16.msra.mxu1 %v1787_v27 }
 0x126   :  { %1792 = vmatprep.subr.bf16.mxu1 %v1791_v31 }
 0x129   :  { %1794 = vmatpush3.bf16.msra.mxu1 %v1791_v31 }
 0x12a   :  { %1796 = vmatprep.subr.bf16.mxu1 %v1795_v36 }
 0x12d   :  { %1798 = vmatpush3.bf16.msra.mxu1 %v1795_v36 }
 0x12e   :  { %1800 = vmatprep.subr.bf16.mxu1 %v1799_v40 }
 0x131   :  { %1802 = vmatpush3.bf16.msra.mxu1 %v1799_v40 }
 0x132   :  { %1827 = vmatprep.subr.bf16.mxu1 %v2010_v22 }
 0x1e7   :  { %v333_v42 = vpop.f32.mrb[16].mxu1 }
 0x1e8   :  { %v423_v43 = vmul.f32 0.0078125, %v333_v42  ;;  %v1497_v45 = vpop.f32.mrb[17].mxu1 }
 0x1e9   :  { %v419_v46 = vpop.f32.mrb[0].mxu0 }
 0x1ea   :  { %v425_v48 = vmul.f32 %v423_v43, %v423_v43  ;;  %v424_v49 = vmul.f32 0.0078125, %v419_v46  ;;  %v1532_v51 = vpop.f32.mrb[1].mxu0 }
 0x1ec   :  { %v426_v52 = vsub.f32 %v424_v49, %v425_v48 }
 0x1ee   :  { %v427_v54 = vmax.f32 %v426_v52, 0.0 }
 0x1f0   :  { %v428_v55 = vadd.f32 1e-05, %v427_v54 }
 0x1f2   :  { %1891 = vrsqrt.f32 %v428_v55 }
 0x1fc   :  { %v1892_v63 = vpop.eup %1891 }
 0x1fd   :  { %v430_v0 = vmul.f32 %v1892_v63, %v71_v60 }
 0x1ff   :  { %v431_v3 = vmul.f32 %v430_v0, %v423_v43  ;;  %v437_v5 = vrot.slane %v430_v0, %v2319_v61 }
 0x201   :  { %v432_v6 = vsub.f32 %v72_v2, %v431_v3  ;;  %v439_v7 = vmul.f32 %v437_v5, %v2169_v25  ;;  %v440_v9 = vmul.f32 %v2167_v24, %v437_v5  ;;  %v441_v10 = vmul.f32 %v437_v5, %v2181_v32 }
 0x202   :  { %v442_v11 = vmul.f32 %v2177_v29, %v437_v5  ;;  %v443_v12 = vmul.f32 %v437_v5, %v2193_v38  ;;  %v444_v13 = vmul.f32 %v2189_v35, %v437_v5  ;;  %v445_v14 = vmul.f32 %v437_v5, %v2205_v44 }
 0x203   :  { %v459_v15 = vrot.slane %v432_v6, %v2319_v61  ;;  %v446_v16 = vmul.f32 %v2201_v41, %v437_v5  ;;  %v447_v17 = vmul.f32 %v437_v5, %v2217_v50  ;;  %v448_v25 = vmul.f32 %v2213_v47, %v437_v5 }
 0x204   :  { %v449_v24 = vmul.f32 %v437_v5, %v2229_v56  ;;  %v450_v32 = vmul.f32 %v2225_v53, %v437_v5  ;;  %v451_v29 = vmul.f32 %v437_v5, %v2241_v62  ;;  %v452_v38 = vmul.f32 %v2237_v59, %v437_v5 }
 0x205   :  { %v461_v18 = vadd.f32 %v459_v15, %v439_v7  ;;  %v462_v35 = vadd.f32 %v459_v15, %v440_v9  ;;  %v463_v19 = vadd.f32 %v459_v15, %v441_v10  ;;  %v464_v44 = vadd.f32 %v459_v15, %v442_v11 }
 0x206   :  { %v465_v20 = vadd.f32 %v459_v15, %v443_v12  ;;  %v466_v21 = vadd.f32 %v459_v15, %v444_v13  ;;  %v467_v26 = vadd.f32 %v459_v15, %v445_v14  ;;  %v468_v41 = vadd.f32 %v459_v15, %v446_v16 }
 0x207   :  { %v477_v27 = vmax.f32 %v461_v18, 0.0  ;;  %v478_v50 = vmax.f32 %v462_v35, 0.0  ;;  %v479_v28 = vmax.f32 %v463_v19, 0.0  ;;  %v469_v47 = vadd.f32 %v459_v15, %v447_v17 }
 0x208   :  { %v470_v56 = vadd.f32 %v459_v15, %v448_v25  ;;  %v471_v30 = vadd.f32 %v459_v15, %v449_v24  ;;  %v472_v53 = vadd.f32 %v459_v15, %v450_v32  ;;  %v473_v62 = vadd.f32 %v459_v15, %v451_v29 }
 0x209   :  { %1565 = vmatprep.mubr.f32.mxu1 %v477_v27  ;;  %v474_v31 = vadd.f32 %v459_v15, %v452_v38  ;;  %v453_v59 = vmul.f32 %v437_v5, %v2253_v4  ;;  %v454_v33 = vmul.f32 %v2249_v1, %v437_v5  ;;  %v480_v34 = vmax.f32 %v464_v44, 0.0 }
 0x20a   :  { %1566 = vmatmul.mubr.f32.vlgmr.msra.gmra.mrb[18].mxu1 %v478_v50  ;;  %v481_v39 = vmax.f32 %v465_v20, 0.0  ;;  %v482_v40 = vmax.f32 %v466_v21, 0.0  ;;  %v483_v42 = vmax.f32 %v467_v26, 0.0  ;;  %v484_v43 = vmax.f32 %v468_v41, 0.0 }
 0x20b   :  { %1568 = vmatprep.mubr.f32.mxu1 %v479_v28  ;;  %v475_v36 = vadd.f32 %v459_v15, %v453_v59  ;;  %v476_v37 = vadd.f32 %v459_v15, %v454_v33  ;;  %v485_v45 = vmax.f32 %v469_v47, 0.0  ;;  %v486_v46 = vmax.f32 %v470_v56, 0.0 }
 0x20c   :  { %v487_v48 = vmax.f32 %v471_v30, 0.0  ;;  %v488_v1 = vmax.f32 %v472_v53, 0.0  ;;  %v489_v4 = vmax.f32 %v473_v62, 0.0  ;;  %v490_v49 = vmax.f32 %v474_v31, 0.0 }
 0x20d   :  { %v491_v51 = vmax.f32 %v475_v36, 0.0  ;;  %v492_v52 = vmax.f32 %v476_v37, 0.0 }
 0x20e   :  { %1569 = vmatmul.mubr.f32.gmra.mrb[20].mxu1 %v480_v34 }
 0x20f   :  { %1571 = vmatprep.mubr.f32.mxu1 %v481_v39  ;;  %v882_v39 = vld [vmem:[#allocation3] sm:$0xff] }
 0x212   :  { %1572 = vmatmul.mubr.f32.gmra.mrb[22].mxu1 %v482_v40  ;;  %v883_v40 = vld [vmem:[#allocation3 + $0x8] sm:$0xff] }
 0x213   :  { %1574 = vmatprep.mubr.f32.mxu1 %v483_v42  ;;  %v1851_v42 = vpack.c.bf16 %v883_v40, %v882_v39 }
 0x216   :  { %1575 = vmatmul.mubr.f32.gmra.mrb[24].mxu1 %v484_v43  ;;  %v884_v43 = vld [vmem:[#allocation3 + $0x10] sm:$0xff] }
 0x217   :  { %1577 = vmatprep.mubr.f32.mxu1 %v485_v45  ;;  %v885_v45 = vld [vmem:[#allocation3 + $0x18] sm:$0xff] }
 0x21a   :  { %1578 = vmatmul.mubr.f32.gmra.mrb[26].mxu1 %v486_v46  ;;  %v1855_v46 = vpack.c.bf16 %v885_v45, %v884_v43 }
 0x21b   :  { %1580 = vmatprep.mubr.f32.mxu1 %v487_v48  ;;  %v886_v48 = vld [vmem:[#allocation3 + $0x20] sm:$0xff] }
 0x21e   :  { %1581 = vmatmul.mubr.f32.gmra.mrb[28].mxu1 %v488_v1  ;;  %v887_v1 = vld [vmem:[#allocation3 + $0x28] sm:$0xff] }
 0x21f   :  { %1583 = vmatprep.mubr.f32.mxu1 %v489_v4  ;;  %v888_v4 = vld [vmem:[#allocation3 + $0x30] sm:$0xff] }
 0x222   :  { %1584 = vmatmul.mubr.f32.gmra.mrb[30].mxu1 %v490_v49  ;;  %v889_v49 = vld [vmem:[#allocation3 + $0x38] sm:$0xff] }
 0x223   :  { %1586 = vmatprep.mubr.f32.mxu1 %v491_v51  ;;  %v1863_v51 = vpack.c.bf16 %v889_v49, %v888_v4 }
 0x226   :  { %1587 = vmatmul.mubr.f32.gmra.mrb[32].mxu1 %v492_v52  ;;  %v891_v52 = vld [vmem:[#allocation3 + $0x48] sm:$0xff] }
 0x227   :  { %1656 = vmatprep.mubr.msk.f32.mxu1 %vm2011_vm1, %v2012_v23 }
 0x2dd   :  { %v2344_v54 = vpop.f32.mrb[18].mxu1 }
 0x2de   :  { %v727_v55 = vmul.f32 %v2344_v54, %v2344_v54  ;;  %v2348_v58 = vpop.f32.mrb[19].mxu1 }
 0x2df   :  { %v1804_v60 = vpack.c.bf16 %v2344_v54, %v2348_v58  ;;  %v726_v63 = vmul.f32 %v2348_v58, %v2348_v58 }
 0x2e1   :  { %v1828_v0 = vpack.c.bf16 %v727_v55, %v726_v63  ;;  %v2354_v2 = vpop.f32.mrb[20].mxu1  ;;  %1805 = vmatpush3.bf16.msra.mxu0 %v1804_v60  ;;  %v892_v60 = vld [vmem:[#allocation3 + $0x50] sm:$0xff]  ;;  %v893_v63 = vld [vmem:[#allocation3 + $0x58] sm:$0xff] }
 0x2e2   :  { %v729_v23 = vmul.f32 %v2354_v2, %v2354_v2  ;;  %v2358_v3 = vpop.f32.mrb[21].mxu1  ;;  %1806 = vmatprep.subr.bf16.mxu0 %v2010_v22 }
 0x2e3   :  { %v1807_v5 = vpack.c.bf16 %v2354_v2, %v2358_v3  ;;  %v728_v6 = vmul.f32 %v2358_v3, %v2358_v3  ;;  %1829 = vmatpush3.bf16.msra.mxu1 %v1828_v0  ;;  %v894_v0 = vld [vmem:[#allocation3 + $0x60] sm:$0xff] }
 0x2e4   :  { %1830 = vmatprep.subr.bf16.mxu1 %v2010_v22 }
 0x2e5   :  { %v1831_v7 = vpack.c.bf16 %v729_v23, %v728_v6  ;;  %v2366_v9 = vpop.f32.mrb[22].mxu1  ;;  %1808 = vmatpush3.bf16.msra.mxu0 %v1807_v5  ;;  %v1871_v23 = vpack.c.bf16 %v893_v63, %v892_v60  ;;  %v895_v5 = vld [vmem:[#allocation3 + $0x68] sm:$0xff] }
 0x2e6   :  { %v731_v10 = vmul.f32 %v2366_v9, %v2366_v9  ;;  %v2370_v11 = vpop.f32.mrb[23].mxu1  ;;  %1809 = vmatprep.subr.bf16.mxu0 %v2010_v22  ;;  %v1875_v6 = vpack.c.bf16 %v895_v5, %v894_v0 }
 0x2e7   :  { %v1810_v12 = vpack.c.bf16 %v2366_v9, %v2370_v11  ;;  %v730_v13 = vmul.f32 %v2370_v11, %v2370_v11  ;;  %1832 = vmatpush3.bf16.msra.mxu1 %v1831_v7  ;;  %v896_v7 = vld [vmem:[#allocation3 + $0x70] sm:$0xff] }
 0x2e8   :  { %1833 = vmatprep.subr.bf16.mxu1 %v2010_v22 }
 0x2e9   :  { %v1834_v14 = vpack.c.bf16 %v731_v10, %v730_v13  ;;  %v2378_v15 = vpop.f32.mrb[24].mxu1  ;;  %1811 = vmatpush3.bf16.msra.mxu0 %v1810_v12  ;;  %v897_v10 = vld [vmem:[#allocation3 + $0x78] sm:$0xff] }
 0x2ea   :  { %v733_v16 = vmul.f32 %v2378_v15, %v2378_v15  ;;  %v2382_v17 = vpop.f32.mrb[25].mxu1  ;;  %1812 = vmatprep.subr.bf16.mxu0 %v2010_v22  ;;  %v1879_v12 = vpack.c.bf16 %v897_v10, %v896_v7 }
 0x2eb   :  { %v1813_v25 = vpack.c.bf16 %v2378_v15, %v2382_v17  ;;  %v732_v24 = vmul.f32 %v2382_v17, %v2382_v17  ;;  %1835 = vmatpush3.bf16.msra.mxu1 %v1834_v14 }
 0x2ec   :  { %1836 = vmatprep.subr.bf16.mxu1 %v2010_v22 }
 0x2ed   :  { %v1837_v32 = vpack.c.bf16 %v733_v16, %v732_v24  ;;  %v2390_v29 = vpop.f32.mrb[26].mxu1  ;;  %1814 = vmatpush3.bf16.msra.mxu0 %v1813_v25 }
 0x2ee   :  { %v735_v38 = vmul.f32 %v2390_v29, %v2390_v29  ;;  %v2394_v18 = vpop.f32.mrb[27].mxu1  ;;  %1815 = vmatprep.subr.bf16.mxu0 %v2010_v22 }
 0x2ef   :  { %v1816_v35 = vpack.c.bf16 %v2390_v29, %v2394_v18  ;;  %v734_v19 = vmul.f32 %v2394_v18, %v2394_v18  ;;  %1838 = vmatpush3.bf16.msra.mxu1 %v1837_v32 }
 0x2f0   :  { %1839 = vmatprep.subr.bf16.mxu1 %v2010_v22 }
 0x2f1   :  { %v1840_v44 = vpack.c.bf16 %v735_v38, %v734_v19  ;;  %v2402_v20 = vpop.f32.mrb[28].mxu1  ;;  %1817 = vmatpush3.bf16.msra.mxu0 %v1816_v35 }
 0x2f2   :  { %v737_v21 = vmul.f32 %v2402_v20, %v2402_v20  ;;  %v2406_v26 = vpop.f32.mrb[29].mxu1  ;;  %1818 = vmatprep.subr.bf16.mxu0 %v2010_v22 }
 0x2f3   :  { %v1819_v41 = vpack.c.bf16 %v2402_v20, %v2406_v26  ;;  %v736_v27 = vmul.f32 %v2406_v26, %v2406_v26  ;;  %1841 = vmatpush3.bf16.msra.mxu1 %v1840_v44 }
 0x2f4   :  { %1842 = vmatprep.subr.bf16.mxu1 %v2010_v22 }
 0x2f5   :  { %v1843_v50 = vpack.c.bf16 %v737_v21, %v736_v27  ;;  %v2414_v28 = vpop.f32.mrb[30].mxu1  ;;  %1820 = vmatpush3.bf16.msra.mxu0 %v1819_v41  ;;  %v509_v21 = vld [vmem:[%s2624_s6] sm:$0x1] }
 0x2f6   :  { %v739_v47 = vmul.f32 %v2414_v28, %v2414_v28  ;;  %v2418_v56 = vpop.f32.mrb[31].mxu1  ;;  %1821 = vmatprep.subr.bf16.mxu0 %v2010_v22 }
 0x2f7   :  { %v1822_v30 = vpack.c.bf16 %v2414_v28, %v2418_v56  ;;  %v738_v53 = vmul.f32 %v2418_v56, %v2418_v56  ;;  %1844 = vmatpush3.bf16.msra.mxu1 %v1843_v50  ;;  %v510_v50 = vld [vmem:[%s2625_s7] sm:$0x1] }
 0x2f8   :  { %1845 = vmatprep.subr.bf16.mxu1 %v2010_v22 }
 0x2f9   :  { %v1846_v62 = vpack.c.bf16 %v739_v47, %v738_v53  ;;  %v2426_v31 = vpop.f32.mrb[32].mxu1  ;;  %1823 = vmatpush3.bf16.msra.mxu0 %v1822_v30 }
 0x2fa   :  { %v741_v59 = vmul.f32 %v2426_v31, %v2426_v31  ;;  %v2430_v33 = vpop.f32.mrb[33].mxu1  ;;  %1824 = vmatprep.subr.bf16.mxu0 %v2010_v22 }
 0x2fb   :  { %v1825_v34 = vpack.c.bf16 %v2426_v31, %v2430_v33  ;;  %v740_v36 = vmul.f32 %v2430_v33, %v2430_v33  ;;  %1847 = vmatpush3.bf16.msra.mxu1 %v1846_v62 }
 0x2fc   :  { %1848 = vmatprep.subr.bf16.mxu1 %v2010_v22  ;;  %v1859_v22 = vpack.c.bf16 %v887_v1, %v886_v48 }
 0x2fd   :  { %v1849_v37 = vpack.c.bf16 %v741_v59, %v740_v36  ;;  %1826 = vmatpush3.bf16.msra.mxu0 %v1825_v34 }
 0x2fe   :  { %1852 = vmatprep.subr.bf16.mxu0 %v1851_v42 }
 0x2ff   :  { %1850 = vmatpush3.bf16.msra.mxu1 %v1849_v37 }
 0x300   :  { %1622 = vmatmul.mubr.f32.vlgmr.msra.gmra.mrb[2].mxu0 %v2013_v8 }
 0x301   :  { %1854 = vmatpush3.bf16.msra.mxu0 %v1851_v42 }
 0x302   :  { %1657 = vmatmul.mubr.f32.vlgmr.msra.gmra.mrb[34].mxu1 %v2013_v8  ;;  %1856 = vmatprep.subr.bf16.mxu0 %v1855_v46  ;;  %v890_v8 = vld [vmem:[#allocation3 + $0x40] sm:$0xff] }
 0x303   :  { %v1867_v55 = vpack.c.bf16 %v891_v52, %v890_v8 }
 0x305   :  { %1858 = vmatpush3.bf16.msra.mxu0 %v1855_v46 }
 0x306   :  { %1860 = vmatprep.subr.bf16.mxu0 %v1859_v22 }
 0x309   :  { %1862 = vmatpush3.bf16.msra.mxu0 %v1859_v22 }
 0x30a   :  { %1864 = vmatprep.subr.bf16.mxu0 %v1863_v51 }
 0x30d   :  { %1866 = vmatpush3.bf16.msra.mxu0 %v1863_v51 }
 0x30e   :  { %1868 = vmatprep.subr.bf16.mxu0 %v1867_v55 }
 0x311   :  { %1870 = vmatpush3.bf16.msra.mxu0 %v1867_v55 }
 0x312   :  { %1872 = vmatprep.subr.bf16.mxu0 %v1871_v23 }
 0x315   :  { %1874 = vmatpush3.bf16.msra.mxu0 %v1871_v23 }
 0x316   :  { %1876 = vmatprep.subr.bf16.mxu0 %v1875_v6 }
 0x319   :  { %1878 = vmatpush3.bf16.msra.mxu0 %v1875_v6 }
 0x31a   :  { %1880 = vmatprep.subr.bf16.mxu0 %v1879_v12 }
 0x31d   :  { %1882 = vmatpush3.bf16.msra.mxu0 %v1879_v12 }
 0x3d3   :  { %v722_v13 = vpop.f32.mrb[2].mxu0 }
 0x3d4   :  { %v812_v14 = vmul.f32 0.0078125, %v722_v13  ;;  %v1623_v16 = vpop.f32.mrb[3].mxu0 }
 0x3d5   :  { %v808_v25 = vpop.f32.mrb[34].mxu1 }
 0x3d6   :  { %v814_v24 = vmul.f32 %v812_v14, %v812_v14  ;;  %v813_v32 = vmul.f32 0.0078125, %v808_v25  ;;  %v1658_v38 = vpop.f32.mrb[35].mxu1  ;;  %v2465_v25 = vand.u32 127, %v434_v57 }
 0x3d8   :  { %v815_v35 = vsub.f32 %v813_v32, %v814_v24  ;;  %v1278_v24 = vld [vmem:[%s2627_s9] ss:$0 sm:$0xff]  ;;  %vm1052_vm2 = vcmp.lt.s32.totalorder %v2465_v25, 16  ;;  %s2014_s9 = smov [#allocation6]  }
 0x3d9   :  { %s1250_s16 = sshll.u32 %s2014_s9, 4  ;;  %s1251_s16 = int_to_ptr.vmem [resolvable:$true] %s1250_s16 }
 0x3da   :  { %v816_v19 = vmax.f32 %v815_v35, 0.0  ;;  %s1981_s17 = scalar_lea.vmem %s1251_s16, 2048  ;;  %p1986_p9 = scmp.lt.s32.totalorder %s1251_s16, %s1251_s16 }
 0x3db   :  { %p1982_p8 = scmp.ne.s32.totalorder %s1251_s16, %s1981_s17  ;;  %p1987_p10 = scmp.lt.s32.totalorder %s1981_s17, %s1981_s17 }
 0x3dc   :  { %v817_v44 = vadd.f32 1e-05, %v816_v19 }
 0x3dd   :  { %p1988_p11 = por %p1987_p10, %p1986_p9 }
 0x3de   :  { %1893 = vrsqrt.f32 %v817_v44 }
 0x3df   :  { %p1989_p12 = pnand %p1988_p11, %p1982_p8 }
 0x3e8   :  { %v1894_v41 = vpop.eup %1893 }
 0x3e9   :  { %v819_v27 = vmul.f32 %v1894_v41, %v509_v21 }
 0x3eb   :  { %v820_v47 = vmul.f32 %v819_v27, %v812_v14  ;;  %v826_v30 = vrot.slane %v819_v27, %v2319_v61 }
 0x3ed   :  { %v821_v53 = vsub.f32 %v510_v50, %v820_v47  ;;  %v828_v62 = vmul.f32 %v826_v30, %v2348_v58  ;;  %v829_v59 = vmul.f32 %v2344_v54, %v826_v30  ;;  %v830_v34 = vmul.f32 %v826_v30, %v2358_v3 }
 0x3ee   :  { %v831_v36 = vmul.f32 %v2354_v2, %v826_v30  ;;  %v832_v37 = vmul.f32 %v826_v30, %v2370_v11  ;;  %v833_v39 = vmul.f32 %v2366_v9, %v826_v30  ;;  %v834_v40 = vmul.f32 %v826_v30, %v2382_v17 }
 0x3ef   :  { %v848_v42 = vrot.slane %v821_v53, %v2319_v61  ;;  %v835_v43 = vmul.f32 %v2378_v15, %v826_v30  ;;  %v836_v45 = vmul.f32 %v826_v30, %v2394_v18  ;;  %v837_v58 = vmul.f32 %v2390_v29, %v826_v30 }
 0x3f0   :  { %v838_v54 = vmul.f32 %v826_v30, %v2406_v26  ;;  %v839_v3 = vmul.f32 %v2402_v20, %v826_v30  ;;  %v840_v2 = vmul.f32 %v826_v30, %v2418_v56  ;;  %v841_v11 = vmul.f32 %v2414_v28, %v826_v30 }
 0x3f1   :  { %v850_v46 = vadd.f32 %v848_v42, %v828_v62  ;;  %v851_v9 = vadd.f32 %v848_v42, %v829_v59  ;;  %v852_v48 = vadd.f32 %v848_v42, %v830_v34  ;;  %v853_v17 = vadd.f32 %v848_v42, %v831_v36 }
 0x3f2   :  { %v854_v1 = vadd.f32 %v848_v42, %v832_v37  ;;  %v855_v61 = vadd.f32 %v848_v42, %v833_v39  ;;  %v856_v22 = vadd.f32 %v848_v42, %v834_v40  ;;  %v857_v15 = vadd.f32 %v848_v42, %v835_v43 }
 0x3f3   :  { %v866_v4 = vmax.f32 %v850_v46, 0.0  ;;  %v867_v18 = vmax.f32 %v851_v9, 0.0  ;;  %v868_v49 = vmax.f32 %v852_v48, 0.0  ;;  %v858_v29 = vadd.f32 %v848_v42, %v836_v45 }
 0x3f4   :  { %v859_v26 = vadd.f32 %v848_v42, %v837_v58  ;;  %v860_v51 = vadd.f32 %v848_v42, %v838_v54  ;;  %v861_v20 = vadd.f32 %v848_v42, %v839_v3  ;;  %v862_v56 = vadd.f32 %v848_v42, %v840_v2 }
 0x3f5   :  { %1691 = vmatprep.mubr.f32.mxu0 %v866_v4  ;;  %v863_v8 = vadd.f32 %v848_v42, %v841_v11  ;;  %v842_v28 = vmul.f32 %v826_v30, %v2430_v33  ;;  %v843_v52 = vmul.f32 %v2426_v31, %v826_v30  ;;  %v869_v55 = vmax.f32 %v853_v17, 0.0 }
 0x3f6   :  { %1692 = vmatmul.mubr.f32.vlgmr.msra.gmra.mrb[4].mxu0 %v867_v18  ;;  %v870_v0 = vmax.f32 %v854_v1, 0.0  ;;  %v871_v23 = vmax.f32 %v855_v61, 0.0  ;;  %v872_v5 = vmax.f32 %v856_v22, 0.0  ;;  %v873_v6 = vmax.f32 %v857_v15, 0.0 }
 0x3f7   :  { %1694 = vmatprep.mubr.f32.mxu0 %v868_v49  ;;  %v864_v60 = vadd.f32 %v848_v42, %v842_v28  ;;  %v865_v63 = vadd.f32 %v848_v42, %v843_v52  ;;  %v874_v7 = vmax.f32 %v858_v29, 0.0  ;;  %v875_v10 = vmax.f32 %v859_v26, 0.0 }
 0x3f8   :  { %v876_v12 = vmax.f32 %v860_v51, 0.0  ;;  %v877_v31 = vmax.f32 %v861_v20, 0.0  ;;  %v878_v33 = vmax.f32 %v862_v56, 0.0  ;;  %v879_v13 = vmax.f32 %v863_v8, 0.0 }
 0x3f9   :  { %v880_v14 = vmax.f32 %v864_v60, 0.0  ;;  %v881_v16 = vmax.f32 %v865_v63, 0.0 }
 0x3fa   :  { %1695 = vmatmul.mubr.f32.gmra.mrb[6].mxu0 %v869_v55 }
 0x3fb   :  { %1697 = vmatprep.mubr.f32.mxu0 %v870_v0 }
 0x3fe   :  { %1698 = vmatmul.mubr.f32.gmra.mrb[8].mxu0 %v871_v23 }
 0x3ff   :  { %1700 = vmatprep.mubr.f32.mxu0 %v872_v5 }
 0x402   :  { %1701 = vmatmul.mubr.f32.gmra.mrb[10].mxu0 %v873_v6 }
 0x403   :  { %1703 = vmatprep.mubr.f32.mxu0 %v874_v7 }
 0x406   :  { %1704 = vmatmul.mubr.f32.gmra.mrb[12].mxu0 %v875_v10 }
 0x407   :  { %1706 = vmatprep.mubr.f32.mxu0 %v876_v12 }
 0x40a   :  { %1707 = vmatmul.mubr.f32.gmra.mrb[14].mxu0 %v877_v31 }
 0x40b   :  { %1709 = vmatprep.mubr.f32.mxu0 %v878_v33 }
 0x40e   :  { %1710 = vmatmul.mubr.f32.gmra.mrb[16].mxu0 %v879_v13 }
 0x40f   :  { %1712 = vmatprep.mubr.f32.mxu0 %v880_v14 }
 0x412   :  { %1713 = vmatmul.mubr.f32.gmra.mrb[18].mxu0 %v881_v16 }
 0x4c9   :  { %v1693_v32 = vpop.f32.mrb[4].mxu0 }
 0x4ca   :  { %v977_v38 = vadd.f32 %v1693_v32, %v1278_v24  ;;  %v971_v35 = vpop.f32.mrb[5].mxu0 }
 0x4cb   :  { %v972_v19 = vadd.f32 %v1278_v24, %v971_v35 }
 0x4cc   :  { %v1054_v44 = vsel %vm1052_vm2, %v977_v38, -1e+30 }
 0x4cd   :  { %1071 = vmax.xlane.f32.xlu0 %v1054_v44  ;;  %v1696_v21 = vpop.f32.mrb[6].mxu0  ;;  %v2475_v41 = vsel %vm1052_vm2, %v972_v19, -1e+30 }
 0x4ce   :  { %v987_v57 = vadd.f32 %v1696_v21, %v1278_v24  ;;  %v981_v27 = vpop.f32.mrb[7].mxu0 }
 0x4cf   :  { %v982_v50 = vadd.f32 %v1278_v24, %v981_v27 }
 0x4d0   :  { %v1056_v47 = vsel %vm1052_vm2, %v987_v57, -1e+30 }
 0x4d1   :  { %1075 = vmax.xlane.f32.xlu1 %v1056_v47  ;;  %v1699_v30 = vpop.f32.mrb[8].mxu0  ;;  %1069 = vmax.xlane.f32.xlu0 %v2475_v41  ;;  %v1055_v53 = vsel %vm1052_vm2, %v982_v50, -1e+30 }
 0x4d2   :  { %v997_v62 = vadd.f32 %v1699_v30, %v1278_v24  ;;  %v991_v59 = vpop.f32.mrb[9].mxu0 }
 0x4d3   :  { %v992_v34 = vadd.f32 %v1278_v24, %v991_v59 }
 0x4d4   :  { %v2484_v36 = vsel %vm1052_vm2, %v997_v62, -1e+30 }
 0x4d5   :  { %v1702_v37 = vpop.f32.mrb[10].mxu0  ;;  %1073 = vmax.xlane.f32.xlu1 %v1055_v53  ;;  %v1057_v39 = vsel %vm1052_vm2, %v992_v34, -1e+30 }
 0x4d6   :  { %v1007_v40 = vadd.f32 %v1702_v37, %v1278_v24  ;;  %v1001_v42 = vpop.f32.mrb[11].mxu0  ;;  %1077 = vmax.xlane.f32.xlu0 %v1057_v39 }
 0x4d7   :  { %v1002_v43 = vadd.f32 %v1278_v24, %v1001_v42 }
 0x4d8   :  { %v2490_v45 = vsel %vm1052_vm2, %v1007_v40, -1e+30 }
 0x4d9   :  { %v1705_v58 = vpop.f32.mrb[12].mxu0  ;;  %1079 = vmax.xlane.f32.xlu1 %v2484_v36  ;;  %v1059_v54 = vsel %vm1052_vm2, %v1002_v43, -1e+30 }
 0x4da   :  { %v1017_v3 = vadd.f32 %v1705_v58, %v1278_v24  ;;  %v1011_v2 = vpop.f32.mrb[13].mxu0  ;;  %1081 = vmax.xlane.f32.xlu0 %v1059_v54 }
 0x4db   :  { %v1012_v11 = vadd.f32 %v1278_v24, %v1011_v2 }
 0x4dc   :  { %v2497_v46 = vsel %vm1052_vm2, %v1017_v3, -1e+30 }
 0x4dd   :  { %v1708_v9 = vpop.f32.mrb[14].mxu0  ;;  %1083 = vmax.xlane.f32.xlu1 %v2490_v45  ;;  %v1061_v48 = vsel %vm1052_vm2, %v1012_v11, -1e+30 }
 0x4de   :  { %v1027_v17 = vadd.f32 %v1708_v9, %v1278_v24  ;;  %v1021_v1 = vpop.f32.mrb[15].mxu0  ;;  %1085 = vmax.xlane.f32.xlu0 %v1061_v48 }
 0x4df   :  { %v1022_v61 = vadd.f32 %v1278_v24, %v1021_v1 }
 0x4e0   :  { %v2504_v22 = vsel %vm1052_vm2, %v1027_v17, -1e+30 }
 0x4e1   :  { %v1711_v15 = vpop.f32.mrb[16].mxu0  ;;  %1087 = vmax.xlane.f32.xlu1 %v2497_v46  ;;  %v1063_v4 = vsel %vm1052_vm2, %v1022_v61, -1e+30 }
 0x4e2   :  { %v1037_v18 = vadd.f32 %v1711_v15, %v1278_v24  ;;  %v1031_v49 = vpop.f32.mrb[17].mxu0  ;;  %1089 = vmax.xlane.f32.xlu0 %v1063_v4 }
 0x4e3   :  { %v1032_v29 = vadd.f32 %v1278_v24, %v1031_v49 }
 0x4e4   :  { %v2511_v26 = vsel %vm1052_vm2, %v1037_v18, -1e+30 }
 0x4e5   :  { %v1714_v51 = vpop.f32.mrb[18].mxu0  ;;  %1091 = vmax.xlane.f32.xlu1 %v2504_v22  ;;  %v2516_v20 = vsel %vm1052_vm2, %v1032_v29, -1e+30 }
 0x4e6   :  { %v1047_v56 = vadd.f32 %v1714_v51, %v1278_v24  ;;  %v1041_v8 = vpop.f32.mrb[19].mxu0  ;;  %1093 = vmax.xlane.f32.xlu0 %v2516_v20 }
 0x4e7   :  { %v1042_v28 = vadd.f32 %v1278_v24, %v1041_v8 }
 0x4e8   :  { %v2521_v52 = vsel %vm1052_vm2, %v1047_v56, -1e+30 }
 0x4e9   :  { %1095 = vmax.xlane.f32.xlu1 %v2511_v26  ;;  %v2526_v55 = vsel %vm1052_vm2, %v1042_v28, -1e+30 }
 0x4ea   :  { %1097 = vmax.xlane.f32.xlu0 %v2526_v55 }
 0x4ed   :  { %1099 = vmax.xlane.f32.xlu1 %v2521_v52 }
 0x55a   :  { %v1072_v60 = vpop.xlane.xlu0 %1071 }
 0x55b   :  { %v2530_v63 = vsub.f32 %v1054_v44, %v1072_v60 }
 0x55d   :  { %v1119_v0 = vmul.f32 1.442695, %v2530_v63 }
 0x55e   :  { %v1076_v23 = vpop.xlane.xlu1 %1075  ;;  %v1070_v5 = vpop.xlane.xlu0 %1069 }
 0x55f   :  { %1895 = vpow2.f32 %v1119_v0  ;;  %v2533_v6 = vsub.f32 %v1056_v47, %v1076_v23  ;;  %v2536_v7 = vsub.f32 %v2475_v41, %v1070_v5 }
 0x561   :  { %v1123_v10 = vmul.f32 1.442695, %v2533_v6  ;;  %v1117_v12 = vmul.f32 1.442695, %v2536_v7 }
 0x562   :  { %v1074_v31 = vpop.xlane.xlu1 %1073 }
 0x563   :  { %1897 = vpow2.f32 %v1123_v10  ;;  %v2540_v33 = vsub.f32 %v1055_v53, %v1074_v31  ;;  %v1078_v13 = vpop.xlane.xlu0 %1077 }
 0x564   :  { %1899 = vpow2.f32 %v1117_v12  ;;  %v2542_v14 = vsub.f32 %v1057_v39, %v1078_v13 }
 0x565   :  { %v1121_v16 = vmul.f32 1.442695, %v2540_v33 }
 0x566   :  { %v1080_v25 = vpop.xlane.xlu1 %1079  ;;  %v1125_v38 = vmul.f32 1.442695, %v2542_v14 }
 0x567   :  { %1901 = vpow2.f32 %v1121_v16  ;;  %v2546_v24 = vsub.f32 %v2484_v36, %v1080_v25  ;;  %v1082_v32 = vpop.xlane.xlu0 %1081 }
 0x568   :  { %v2549_v35 = vsub.f32 %v1059_v54, %v1082_v32 }
 0x569   :  { %v1896_v19 = vpop.eup %1895  ;;  %v1127_v44 = vmul.f32 1.442695, %v2546_v24 }
 0x56a   :  { %1151 = vadd.xlane.f32.xlu1 %v1896_v19  ;;  %v1084_v21 = vpop.xlane.xlu1 %1083  ;;  %v1129_v27 = vmul.f32 1.442695, %v2549_v35 }
 0x56b   :  { %1903 = vpow2.f32 %v1127_v44  ;;  %v2553_v41 = vsub.f32 %v2490_v45, %v1084_v21  ;;  %v1086_v57 = vpop.xlane.xlu0 %1085 }
 0x56c   :  { %1905 = vpow2.f32 %v1125_v38  ;;  %v2556_v50 = vsub.f32 %v1061_v48, %v1086_v57 }
 0x56d   :  { %v1898_v47 = vpop.eup %1897  ;;  %v1131_v30 = vmul.f32 1.442695, %v2553_v41 }
 0x56e   :  { %v1900_v53 = vpop.eup %1899  ;;  %1155 = vadd.xlane.f32.xlu1 %v1898_v47  ;;  %v1088_v62 = vpop.xlane.xlu1 %1087  ;;  %v1133_v36 = vmul.f32 1.442695, %v2556_v50 }
 0x56f   :  { %1907 = vpow2.f32 %v1131_v30  ;;  %v2560_v59 = vsub.f32 %v2497_v46, %v1088_v62  ;;  %1149 = vadd.xlane.f32.xlu0 %v1900_v53  ;;  %v1090_v34 = vpop.xlane.xlu0 %1089 }
 0x570   :  { %1909 = vpow2.f32 %v1129_v27  ;;  %v2563_v37 = vsub.f32 %v1063_v4, %v1090_v34 }
 0x571   :  { %v1902_v39 = vpop.eup %1901  ;;  %v1135_v40 = vmul.f32 1.442695, %v2560_v59 }
 0x572   :  { %v1092_v42 = vpop.xlane.xlu1 %1091  ;;  %v1137_v58 = vmul.f32 1.442695, %v2563_v37 }
 0x573   :  { %1911 = vpow2.f32 %v1135_v40  ;;  %v2567_v43 = vsub.f32 %v2504_v22, %v1092_v42  ;;  %1153 = vadd.xlane.f32.xlu0 %v1902_v39  ;;  %v1094_v45 = vpop.xlane.xlu0 %1093 }
 0x574   :  { %1913 = vpow2.f32 %v1133_v36  ;;  %v2571_v54 = vsub.f32 %v2516_v20, %v1094_v45 }
 0x575   :  { %v1904_v3 = vpop.eup %1903  ;;  %v1139_v2 = vmul.f32 1.442695, %v2567_v43 }
 0x576   :  { %v1906_v11 = vpop.eup %1905  ;;  %1159 = vadd.xlane.f32.xlu1 %v1904_v3  ;;  %v1096_v46 = vpop.xlane.xlu1 %1095  ;;  %v1141_v17 = vmul.f32 1.442695, %v2571_v54 }
 0x577   :  { %1915 = vpow2.f32 %v1139_v2  ;;  %v2575_v9 = vsub.f32 %v2511_v26, %v1096_v46  ;;  %1157 = vadd.xlane.f32.xlu0 %v1906_v11  ;;  %v1098_v48 = vpop.xlane.xlu0 %1097 }
 0x578   :  { %1917 = vpow2.f32 %v1137_v58  ;;  %v2579_v1 = vsub.f32 %v2526_v55, %v1098_v48 }
 0x579   :  { %v1908_v61 = vpop.eup %1907  ;;  %v1143_v22 = vmul.f32 1.442695, %v2575_v9 }
 0x57a   :  { %v1910_v15 = vpop.eup %1909  ;;  %1163 = vadd.xlane.f32.xlu1 %v1908_v61  ;;  %v1100_v4 = vpop.xlane.xlu1 %1099  ;;  %v1145_v49 = vmul.f32 1.442695, %v2579_v1 }
 0x57b   :  { %1919 = vpow2.f32 %v1143_v22  ;;  %v2583_v18 = vsub.f32 %v2521_v52, %v1100_v4  ;;  %1161 = vadd.xlane.f32.xlu0 %v1910_v15 }
 0x57c   :  { %1921 = vpow2.f32 %v1141_v17 }
 0x57d   :  { %v1912_v29 = vpop.eup %1911  ;;  %v1147_v26 = vmul.f32 1.442695, %v2583_v18 }
 0x57e   :  { %v1914_v51 = vpop.eup %1913  ;;  %1167 = vadd.xlane.f32.xlu1 %v1912_v29 }
 0x57f   :  { %1923 = vpow2.f32 %v1147_v26  ;;  %1165 = vadd.xlane.f32.xlu0 %v1914_v51 }
 0x580   :  { %1925 = vpow2.f32 %v1145_v49 }
 0x581   :  { %v1916_v20 = vpop.eup %1915 }
 0x582   :  { %v1918_v56 = vpop.eup %1917  ;;  %1171 = vadd.xlane.f32.xlu1 %v1916_v20 }
 0x583   :  { %1169 = vadd.xlane.f32.xlu0 %v1918_v56 }
 0x585   :  { %v1920_v8 = vpop.eup %1919 }
 0x586   :  { %v1922_v28 = vpop.eup %1921  ;;  %1175 = vadd.xlane.f32.xlu1 %v1920_v8 }
 0x587   :  { %1173 = vadd.xlane.f32.xlu0 %v1922_v28 }
 0x589   :  { %v1924_v52 = vpop.eup %1923 }
 0x58a   :  { %v1926_v55 = vpop.eup %1925  ;;  %1179 = vadd.xlane.f32.xlu1 %v1924_v52 }
 0x58b   :  { %1177 = vadd.xlane.f32.xlu0 %v1926_v55 }
 0x5f7   :  { %v1152_v60 = vpop.xlane.xlu1 %1151 }
 0x5f8   :  { %1927 = vlog2.f32 %v1152_v60 }
 0x5fb   :  { %v1156_v0 = vpop.xlane.xlu1 %1155 }
 0x5fc   :  { %1929 = vlog2.f32 %v1156_v0  ;;  %v1150_v23 = vpop.xlane.xlu0 %1149 }
 0x5fd   :  { %1931 = vlog2.f32 %v1150_v23 }
 0x600   :  { %v1154_v5 = vpop.xlane.xlu0 %1153 }
 0x601   :  { %1933 = vlog2.f32 %v1154_v5 }
 0x602   :  { %v1928_v10 = vpop.eup %1927 }
 0x603   :  { %v1184_v12 = vmul.f32 0.6931472, %v1928_v10  ;;  %v1160_v31 = vpop.xlane.xlu1 %1159 }
 0x604   :  { %1935 = vlog2.f32 %v1160_v31  ;;  %v1158_v13 = vpop.xlane.xlu0 %1157 }
 0x605   :  { %v1214_v16 = vsub.f32 %v2530_v63, %v1184_v12  ;;  %1937 = vlog2.f32 %v1158_v13 }
 0x606   :  { %v1930_v25 = vpop.eup %1929 }
 0x607   :  { %v1932_v32 = vpop.eup %1931  ;;  %1230 = vst [vmem:[#allocation6 + $0x8] sm:$0xff] %v1214_v16  ;;  %v1188_v38 = vmul.f32 0.6931472, %v1930_v25  ;;  %v1164_v19 = vpop.xlane.xlu1 %1163 }
 0x608   :  { %v1182_v44 = vmul.f32 0.6931472, %v1932_v32  ;;  %1939 = vlog2.f32 %v1164_v19  ;;  %v1162_v21 = vpop.xlane.xlu0 %1161 }
 0x609   :  { %v1216_v57 = vsub.f32 %v2533_v6, %v1188_v38  ;;  %1941 = vlog2.f32 %v1162_v21 }
 0x60a   :  { %v1213_v27 = vsub.f32 %v2536_v7, %v1182_v44 }
 0x60b   :  { %v1934_v47 = vpop.eup %1933  ;;  %1232 = vst [vmem:[#allocation6 + $0x18] sm:$0xff] %v1216_v57  ;;  %v1168_v30 = vpop.xlane.xlu1 %1167 }
 0x60c   :  { %1229 = vst [vmem:[#allocation6] sm:$0xff] %v1213_v27  ;;  %v1186_v53 = vmul.f32 0.6931472, %v1934_v47  ;;  %1943 = vlog2.f32 %v1168_v30  ;;  %v1166_v63 = vpop.xlane.xlu0 %1165 }
 0x60d   :  { %1945 = vlog2.f32 %v1166_v63 }
 0x60e   :  { %v1936_v62 = vpop.eup %1935  ;;  %v1215_v34 = vsub.f32 %v2540_v33, %v1186_v53 }
 0x60f   :  { %v1938_v36 = vpop.eup %1937  ;;  %v1192_v39 = vmul.f32 0.6931472, %v1936_v62  ;;  %v1172_v40 = vpop.xlane.xlu1 %1171 }
 0x610   :  { %1231 = vst [vmem:[#allocation6 + $0x10] sm:$0xff] %v1215_v34  ;;  %v1190_v42 = vmul.f32 0.6931472, %v1938_v36  ;;  %1947 = vlog2.f32 %v1172_v40  ;;  %v1170_v6 = vpop.xlane.xlu0 %1169 }
 0x611   :  { %v1218_v7 = vsub.f32 %v2546_v24, %v1192_v39  ;;  %1949 = vlog2.f32 %v1170_v6 }
 0x612   :  { %v1940_v45 = vpop.eup %1939  ;;  %v1217_v58 = vsub.f32 %v2542_v14, %v1190_v42 }
 0x613   :  { %v1942_v3 = vpop.eup %1941  ;;  %1234 = vst [vmem:[#allocation6 + $0x28] sm:$0xff] %v1218_v7  ;;  %v1196_v2 = vmul.f32 0.6931472, %v1940_v45  ;;  %v1176_v11 = vpop.xlane.xlu1 %1175 }
 0x614   :  { %1233 = vst [vmem:[#allocation6 + $0x20] sm:$0xff] %v1217_v58  ;;  %v1194_v46 = vmul.f32 0.6931472, %v1942_v3  ;;  %1951 = vlog2.f32 %v1176_v11  ;;  %v1174_v33 = vpop.xlane.xlu0 %1173 }
 0x615   :  { %v1220_v48 = vsub.f32 %v2553_v41, %v1196_v2  ;;  %1953 = vlog2.f32 %v1174_v33 }
 0x616   :  { %v1944_v17 = vpop.eup %1943  ;;  %v1219_v61 = vsub.f32 %v2549_v35, %v1194_v46 }
 0x617   :  { %v1946_v22 = vpop.eup %1945  ;;  %1236 = vst [vmem:[#allocation6 + $0x38] sm:$0xff] %v1220_v48  ;;  %v1200_v24 = vmul.f32 0.6931472, %v1944_v17  ;;  %v1180_v15 = vpop.xlane.xlu1 %1179 }
 0x618   :  { %1235 = vst [vmem:[#allocation6 + $0x30] sm:$0xff] %v1219_v61  ;;  %v1198_v14 = vmul.f32 0.6931472, %v1946_v22  ;;  %1955 = vlog2.f32 %v1180_v15  ;;  %v1178_v4 = vpop.xlane.xlu0 %1177 }
 0x619   :  { %v1222_v49 = vsub.f32 %v2560_v59, %v1200_v24  ;;  %1957 = vlog2.f32 %v1178_v4 }
 0x61a   :  { %v1948_v29 = vpop.eup %1947  ;;  %v1221_v26 = vsub.f32 %v2556_v50, %v1198_v14 }
 0x61b   :  { %v1950_v51 = vpop.eup %1949  ;;  %1238 = vst [vmem:[#allocation6 + $0x48] sm:$0xff] %v1222_v49  ;;  %v1204_v41 = vmul.f32 0.6931472, %v1948_v29 }
 0x61c   :  { %1237 = vst [vmem:[#allocation6 + $0x40] sm:$0xff] %v1221_v26  ;;  %v1202_v20 = vmul.f32 0.6931472, %v1950_v51 }
 0x61d   :  { %v1224_v35 = vsub.f32 %v2567_v43, %v1204_v41 }
 0x61e   :  { %v1952_v56 = vpop.eup %1951  ;;  %v1223_v8 = vsub.f32 %v2563_v37, %v1202_v20 }
 0x61f   :  { %v1954_v28 = vpop.eup %1953  ;;  %1240 = vst [vmem:[#allocation6 + $0x58] sm:$0xff] %v1224_v35  ;;  %v1208_v52 = vmul.f32 0.6931472, %v1952_v56 }
 0x620   :  { %1239 = vst [vmem:[#allocation6 + $0x50] sm:$0xff] %v1223_v8  ;;  %v1206_v55 = vmul.f32 0.6931472, %v1954_v28 }
 0x621   :  { %v1226_v59 = vsub.f32 %v2575_v9, %v1208_v52 }
 0x622   :  { %v1956_v60 = vpop.eup %1955  ;;  %v1225_v50 = vsub.f32 %v2571_v54, %v1206_v55 }
 0x623   :  { %v1958_v0 = vpop.eup %1957  ;;  %1242 = vst [vmem:[#allocation6 + $0x68] sm:$0xff] %v1226_v59  ;;  %v1212_v23 = vmul.f32 0.6931472, %v1956_v60 }
 0x624   :  { %1241 = vst [vmem:[#allocation6 + $0x60] sm:$0xff] %v1225_v50  ;;  %v1210_v43 = vmul.f32 0.6931472, %v1958_v0 }
 0x625   :  { %v1228_v5 = vsub.f32 %v2583_v18, %v1212_v23 }
 0x626   :  { %v1227_v37 = vsub.f32 %v2579_v1, %v1210_v43 }
 0x627   :  { %1244 = vst [vmem:[#allocation6 + $0x78] sm:$0xff] %v1228_v5 }
 0x628   :  { %1243 = vst [vmem:[#allocation6 + $0x70] sm:$0xff] %v1227_v37 }
 0x629   :  { %1992 = shalt.err (!%p1989_p12)
}
 0x62a   :  { %s1993_s19 = scalar_lea.hbm %s2628_s10, 2048 }
 0x62b   :  { %p1994_p13 = scmp.ne.s32.totalorder %s2628_s10, %s1993_s19  ;;  %p1997_p0 = scmp.lt.u32.totalorder %s1993_s19, %s2628_s10 }
 0x62d   :  { %p1999_p1 = pnand %p1997_p0, %p1994_p13 }
 0x62f   :  { %2002 = shalt.err (!%p1999_p1)
}
 0x630   :  { %1256 = dma.vmem_to_hbm [thread:$0]  %s1251_s16, 2048, %s2628_s10, [#allocation5], %s2008_s22, %s2008_s22, %s2009_s23  }
 0x631   :  { %2005 = dma.done.wait [#allocation5], 2048  }
 0x632   :  { %2006 = vsyncadd [#allocation5], 4294965248 }
 0x633   :  { %1260 = vsyncpa [#allocation4], 1 }
 0x634   :  { %1261 = vsyncpa [#allocation5], 1 }

</bundles_post_ra>
